<compile_context>
chip_gen: v7x
topology: tpu7x:2x2x1
jax: 0.10.0
libtpu: 0.0.40
codegen_flags: <defaults>
</compile_context>

<pallas_src>
import numpy as np
import jax
import jax.numpy as jnp
from jax import lax
from jax.experimental import pallas as pl
from jax.experimental.pallas import tpu as pltpu


def _ipow(x, n):
    """x ** n for a static non-negative int n via repeated squaring (VPU only)."""
    if n == 0:
        return jnp.ones_like(x)
    acc = None
    base = x
    while n > 0:
        if n & 1:
            acc = base if acc is None else acc * base
        n >>= 1
        if n:
            base = base * base
    return acc


def _static_int_exponents(dim0):
    """Tuple of static ints if dim0**2 is concrete and integer-valued, else None."""
    try:
        vals = np.asarray(jax.device_get(dim0), dtype=np.float64) ** 2
    except Exception:  # tracer under jit, etc. -> fall back to runtime float pow
        return None
    if (np.all(np.isfinite(vals)) and np.all(vals >= 0) and np.all(vals <= 64)
            and np.all(vals == np.round(vals))):
        return tuple(int(v) for v in np.round(vals))
    return None


def _make_poly_kernel(P, int_exps):
    """Grid-step body.

    alpha2_ref, dim2_ref : SMEM (P,) f32  -- alpha0**2 and dim0**2
    x1_ref               : VMEM (tm, D)
    x2_ref               : VMEM (tn, D)
    out_ref              : VMEM (P, tm, tn)
    """

    def kernel(alpha2_ref, dim2_ref, x1_ref, x2_ref, out_ref):
        # One MXU inner product over the feature axis D, reused for all P params.
        # dot_general contracts the last dim of both operands -> no x2.T relayout.
        sprod = lax.dot_general(
            x1_ref[...], x2_ref[...],
            dimension_numbers=(((1,), (1,)), ((), ())),
            preferred_element_type=jnp.float32)
        for p in range(P):                        # P is small & static: unrolled
            base = sprod + alpha2_ref[p]          # scalar alpha0**2 from SMEM
            if int_exps is not None:
                k_p = _ipow(base, int_exps[p])    # VPU repeated squaring
            else:
                k_p = base ** dim2_ref[p]         # EUP exp/log float pow
            out_ref[p, :, :] = k_p.astype(out_ref.dtype)

    return kernel


def poly_kernel_forward(locations1, locations2, alpha0, dim0, *,
                        tm=None, tn=None, out_dtype=jnp.float32):
    """Pallas implementation of POLYKernel.forward.

    locations1: (M, D) f32, locations2: (N, D) f32
    alpha0, dim0: (P,) f32 learnable parameters (squared inside, matching torch)
    returns: (P, M, N) out_dtype (float32 by default)
    """
    M, D = locations1.shape
    N, D2 = locations2.shape
    assert D == D2
    P = alpha0.shape[0]

    # Lane-dense, VMEM-budgeted tile defaults (full extent for small arrays).
    if tm is None:
        tm = M if M <= 256 else 256        # sublane axis: multiple of 8
    if tn is None:
        tn = N if N <= 512 else 512        # lane axis: multiple of 128 -> unmasked vst
    # Keep the double-buffered (P, tm, tn) output block comfortably inside the
    # scoped VMEM limit (v7x: 64 MiB physical / 32 MiB scoped default). Only
    # shrink along sizes that preserve (8, 128) alignment.
    itemsize = jnp.dtype(out_dtype).itemsize
    while 2 * P * tm * tn * itemsize > (8 << 20) and tn >= 256 and tn % 256 == 0:
        tn //= 2
    while 2 * P * tm * tn * itemsize > (8 << 20) and tm >= 16 and tm % 16 == 0:
        tm //= 2

    # Parameter glue (matches `(self.alpha0 ** 2)`, `(self.dim0 ** 2)` in torch).
    alpha2 = (alpha0.astype(jnp.float32)) ** 2
    dim2 = (dim0.astype(jnp.float32)) ** 2
    int_exps = _static_int_exponents(dim0)

    grid = (pl.cdiv(M, tm), pl.cdiv(N, tn))

    cost = pl.CostEstimate(
        flops=2 * M * N * D + 4 * P * M * N,
        transcendentals=0 if int_exps is not None else 2 * P * M * N,
        bytes_accessed=(itemsize * P * M * N
                        + 4 * grid[1] * M * D + 4 * grid[0] * N * D),
    )

    return pl.pallas_call(
        _make_poly_kernel(P, int_exps),
        out_shape=jax.ShapeDtypeStruct((P, M, N), out_dtype),
        grid_spec=pltpu.PrefetchScalarGridSpec(
            num_scalar_prefetch=0,
            grid=grid,
            in_specs=[
                pl.BlockSpec(memory_space=pltpu.MemorySpace.SMEM),   # alpha0**2
                pl.BlockSpec(memory_space=pltpu.MemorySpace.SMEM),   # dim0**2
                pl.BlockSpec((tm, D), lambda i, j: (i, 0)),          # locations1 tile
                pl.BlockSpec((tn, D), lambda i, j: (j, 0)),          # locations2 tile
            ],
            out_specs=pl.BlockSpec((P, tm, tn), lambda i, j: (0, i, j)),
        ),
        compiler_params=pltpu.CompilerParams(
            dimension_semantics=("parallel", "parallel")),
        cost_estimate=cost,
    )(alpha2, dim2, locations1, locations2)


if __name__ == "__main__":
    key = jax.random.PRNGKey(0)
    k1, k2 = jax.random.split(key)

    # Small shapes: M query points, N support points, D-dim locations, P parameter entries.
    M, N, D, P = 16, 8, 4, 2
    # Scale down so (sprod + alpha0**2) stays positive -> well-defined power.
    locations1 = 0.1 * jax.random.normal(k1, (M, D), dtype=jnp.float32)
    locations2 = 0.1 * jax.random.normal(k2, (N, D), dtype=jnp.float32)

    # Deterministic parameter init (module defaults alpha0=1, dim0=3; P entries).
    alpha0 = jnp.array([1.0, 1.5], dtype=jnp.float32)
    dim0 = jnp.array([3.0, 2.0], dtype=jnp.float32)

    out = poly_kernel_forward(locations1, locations2, alpha0, dim0)
    out = jax.block_until_ready(out)

    # Pure-JAX reference (same semantics as the torch forward).
    ref = (locations1 @ locations2.T)[None, :, :]
    ref = (ref + (alpha0 ** 2)[:, None, None]) ** (dim0 ** 2)[:, None, None]

    assert out.shape == (P, M, N), out.shape
    assert jnp.allclose(out, ref, rtol=1e-5, atol=1e-5), "mismatch vs reference"
    print("KERNEL_OK")
</pallas_src>

<mosaic_0001>
module attributes {stable_mosaic.version = 11 : i64} {
  func.func @kernel(%arg0: i32, %arg1: i32, %arg2: memref<2xf32, #tpu.memory_space<smem>>, %arg3: memref<2xf32, #tpu.memory_space<smem>>, %arg4: memref<16x4xf32, #tpu.memory_space<vmem>>, %arg5: memref<8x4xf32, #tpu.memory_space<vmem>>, %arg6: memref<2x16x8xf32, #tpu.memory_space<vmem>>) attributes {dimension_semantics = [#tpu.dimension_semantics<parallel>, #tpu.dimension_semantics<parallel>], iteration_bounds = array<i64: 1, 1>, scalar_prefetch = 0 : i64, scratch_operands = 0 : i64, tpu.core_type = #tpu.core_type<tc>, window_params = [{transform_indices = @transform_0, window_bounds = array<i64: 2>}, {transform_indices = @transform_1, window_bounds = array<i64: 2>}, {transform_indices = @transform_2, window_bounds = array<i64: 16, 4>}, {transform_indices = @transform_3, window_bounds = array<i64: 8, 4>}, {transform_indices = @transform_4, window_bounds = array<i64: 2, 16, 8>}]} {
    %c0 = arith.constant 0 : index
    %c0_0 = arith.constant 0 : index
    %0 = vector.load %arg4[%c0, %c0_0] : memref<16x4xf32, #tpu.memory_space<vmem>>, vector<16x4xf32>
    %c0_1 = arith.constant 0 : index
    %c0_2 = arith.constant 0 : index
    %1 = vector.load %arg5[%c0_1, %c0_2] : memref<8x4xf32, #tpu.memory_space<vmem>>, vector<8x4xf32>
    %cst = arith.constant dense<0.000000e+00> : vector<16x8xf32>
    %2 = tpu.matmul %0, %1, %cst {dimension_numbers = #tpu.dot_dimension_numbers<[1], [1], [0], [0], [0, 0, 1, 0], [], []>} : vector<16x4xf32>, vector<8x4xf32>, vector<16x8xf32> -> vector<16x8xf32>
    %c0_3 = arith.constant 0 : index
    %3 = memref.load %arg2[%c0_3] : memref<2xf32, #tpu.memory_space<smem>>
    %4 = vector.broadcast %3 : f32 to vector<16x8xf32>
    %5 = arith.addf %2, %4 : vector<16x8xf32>
    %6 = arith.mulf %5, %5 : vector<16x8xf32>
    %7 = arith.mulf %6, %6 : vector<16x8xf32>
    %8 = arith.mulf %7, %7 : vector<16x8xf32>
    %9 = arith.mulf %5, %8 : vector<16x8xf32>
    %c0_4 = arith.constant 0 : index
    %c0_5 = arith.constant 0 : index
    %c0_6 = arith.constant 0 : index
    %10 = vector.load %arg6[%c0_4, %c0_5, %c0_6] : memref<2x16x8xf32, #tpu.memory_space<vmem>>, vector<1x16x8xf32>
    %11 = vector.shape_cast %10 : vector<1x16x8xf32> to vector<16x8xf32>
    %12 = vector.shape_cast %9 : vector<16x8xf32> to vector<1x16x8xf32>
    tpu.vector_store %arg6[%c0_4, %c0_5, %c0_6], %12 {strides = array<i32>} : memref<2x16x8xf32, #tpu.memory_space<vmem>>, vector<1x16x8xf32>,
    %c1 = arith.constant 1 : index
    %13 = memref.load %arg2[%c1] : memref<2xf32, #tpu.memory_space<smem>>
    %14 = vector.broadcast %13 : f32 to vector<16x8xf32>
    %15 = arith.addf %2, %14 : vector<16x8xf32>
    %16 = arith.mulf %15, %15 : vector<16x8xf32>
    %17 = arith.mulf %16, %16 : vector<16x8xf32>
    %c1_7 = arith.constant 1 : index
    %c0_8 = arith.constant 0 : index
    %c0_9 = arith.constant 0 : index
    %18 = vector.load %arg6[%c1_7, %c0_8, %c0_9] : memref<2x16x8xf32, #tpu.memory_space<vmem>>, vector<1x16x8xf32>
    %19 = vector.shape_cast %18 : vector<1x16x8xf32> to vector<16x8xf32>
    %20 = vector.shape_cast %17 : vector<16x8xf32> to vector<1x16x8xf32>
    tpu.vector_store %arg6[%c1_7, %c0_8, %c0_9], %20 {strides = array<i32>} : memref<2x16x8xf32, #tpu.memory_space<vmem>>, vector<1x16x8xf32>,
    return
  }
  func.func @transform_0(%arg0: i32, %arg1: i32) -> i32 {
    %c0_i32 = arith.constant 0 : i32
    %c0_i32_0 = arith.constant 0 : i32
    return %c0_i32 : i32
  }
  func.func @transform_1(%arg0: i32, %arg1: i32) -> i32 {
    %c0_i32 = arith.constant 0 : i32
    %c0_i32_0 = arith.constant 0 : i32
    return %c0_i32 : i32
  }
  func.func @transform_2(%arg0: i32, %arg1: i32) -> (i32, i32) {
    %c0_i32 = arith.constant 0 : i32
    %c0_i32_0 = arith.constant 0 : i32
    return %arg0, %c0_i32 : i32, i32
  }
  func.func @transform_3(%arg0: i32, %arg1: i32) -> (i32, i32) {
    %c0_i32 = arith.constant 0 : i32
    %c0_i32_0 = arith.constant 0 : i32
    return %arg1, %c0_i32 : i32, i32
  }
  func.func @transform_4(%arg0: i32, %arg1: i32) -> (i32, i32, i32) {
    %c0_i32 = arith.constant 0 : i32
    %c0_i32_0 = arith.constant 0 : i32
    return %c0_i32, %arg0, %arg1 : i32, i32, i32
  }
}

</mosaic_0001>

<bundles_post_ra>
// kernel: tpu_custom_call.1
= control target key start
LH: loop header
LB: loop body
LE: loop exit
PB: predicated region body
PF: predicated region fallthrough
CT: control target
= control target key end

     0   :  { %9 = vsyncpa [#allocation3], 0  ;;  %s260_s0 = inlined_call_operand.vmem [shape: f32[2], index: 0, kind: input, shape index: {}]   ;;  %s261_s1 = inlined_call_operand.vmem [shape: f32[2], index: 1, kind: input, shape index: {}]   ;;  %s262_s2 = inlined_call_operand.vmem [shape: f32[16,4], index: 2, kind: input, shape index: {}]   ;;  %s263_s3 = inlined_call_operand.vmem [shape: f32[8,4], index: 3, kind: input, shape index: {}]   ;;  %s264_s4 = inlined_call_operand.vmem [shape: f32[2,16,8], index: 4, kind: output, shape index: {}]  }
   0x1   :  { %s17_s17 = sshll.u32 %s260_s0, 4  ;;  %s18_s17 = int_to_ptr.vmem [resolvable:$true] %s17_s17 }
   0x2   :  { %10 = vsyncpa [#allocation5], 0  ;;  %s27_s20 = sshll.u32 %s261_s1, 4  ;;  %s178_s21 = scalar_lea.vmem %s18_s17, 16  ;;  %s28_s20 = int_to_ptr.vmem [resolvable:$true] %s27_s20 }
   0x3   :  { %p179_p0 = scmp.ne.s32.totalorder %s18_s17, %s178_s21  ;;  %p183_p1 = scmp.lt.s32.totalorder %s18_s17, %s18_s17 }
   0x4   :  { %p184_p2 = scmp.lt.s32.totalorder %s178_s21, %s178_s21 }
   0x6   :  { %p185_p3 = por %p184_p2, %p183_p1 }
   0x8   :  { %p186_p4 = pnand %p185_p3, %p179_p0 }
   0xa   :  { %189 = shalt.err (!%p186_p4)
}
   0xb   :  { %s206_s22 = smov [#allocation2]   ;;  %s190_s23 = scalar_lea.vmem %s28_s20, 16 }
   0xc   :  { %20 = dma.vmem_to_smem %s18_s17, 16, %s206_s22, [#allocation3]  }
   0xd   :  { %p191_p5 = scmp.ne.s32.totalorder %s28_s20, %s190_s23  ;;  %p195_p6 = scmp.lt.s32.totalorder %s28_s20, %s28_s20 }
   0xe   :  { %p196_p7 = scmp.lt.s32.totalorder %s190_s23, %s190_s23 }
  0x10   :  { %p197_p8 = por %p196_p7, %p195_p6 }
  0x12   :  { %p198_p9 = pnand %p197_p8, %p191_p5 }
  0x14   :  { %201 = shalt.err (!%p198_p9)
}
  0x15   :  { %s207_s0 = smov [#allocation4]  }
  0x16   :  { %30 = dma.vmem_to_smem %s28_s20, 16, %s207_s0, [#allocation5]  }
  0x17   :  { %202 = dma.done.wait [#allocation3], 16  }
  0x18   :  { %203 = vsyncadd [#allocation3], 4294967280 }
  0x19   :  { %204 = dma.done.wait [#allocation5], 16  }
  0x1a   :  { %205 = vsyncadd [#allocation5], 4294967280 }
  0x1b   :  { %41 = sfence }
  0x1c   :  { %v44_v0 = vld [vmem:[%s263_s3] sm:$0xff]  ;;  %vm45_vm0 = vcmask 31744   ;;  %v43_v2 = vld [vmem:[%s262_s2 + $0x8] sm:$0xff]  ;;  %s130_s29 = sld [smem:[#allocation2]]  ;;  %s165_s30 = sld [smem:[#allocation2 + $0x1]]  ;;  %vm142_vm1 = vcmask 64512  }
  0x1d   :  { %v42_v1 = vld [vmem:[%s262_s2] sm:$0xff]  ;;  %171 = vmatprep.subr.msk.mxu0 %vm45_vm0, %v44_v0 }
  0x1e   :  { %173 = vmatprep.mubr.msk.f32.mxu0 %vm45_vm0, %v42_v1  ;;  %172 = vmatpush3.xpose.msk.msra.mxu0 %vm45_vm0, %v44_v0 }
  0x21   :  { %174 = vmatmul.mubr.msk.f32.vlgmr.msra.gmra.mrb[0].mxu0 %vm45_vm0, %v43_v2 }
  0x22   :  { %v131_v3 = vstv %s130_s29  ;;  %v146_v4 = vstv %s165_s30 }
  0xf4   :  { %v175_v5 = vpop.f32.mrb[0].mxu0 }
  0xf5   :  { %v121_v6 = vpop.f32.mrb[1].mxu0  ;;  %v133_v7 = vadd.f32 %v175_v5, %v131_v3  ;;  %v148_v8 = vadd.f32 %v175_v5, %v146_v4 }
  0xf6   :  { %v132_v9 = vadd.f32 %v131_v3, %v121_v6  ;;  %v147_v10 = vadd.f32 %v146_v4, %v121_v6 }
  0xf7   :  { %v135_v11 = vmul.f32 %v133_v7, %v133_v7  ;;  %v150_v12 = vmul.f32 %v148_v8, %v148_v8 }
  0xf8   :  { %v134_v13 = vmul.f32 %v132_v9, %v132_v9  ;;  %v149_v14 = vmul.f32 %v147_v10, %v147_v10 }
  0xf9   :  { %v137_v15 = vmul.f32 %v135_v11, %v135_v11  ;;  %v152_v16 = vmul.f32 %v150_v12, %v150_v12 }
  0xfa   :  { %v136_v17 = vmul.f32 %v134_v13, %v134_v13  ;;  %v151_v18 = vmul.f32 %v149_v14, %v149_v14 }
  0xfb   :  { %v139_v19 = vmul.f32 %v137_v15, %v137_v15  ;;  %167 = vst.msk [vmem:[%s264_s4 + $0x18] sm:$0xff] %vm142_vm1, %v152_v16 }
  0xfc   :  { %v138_v20 = vmul.f32 %v136_v17, %v136_v17  ;;  %166 = vst.msk [vmem:[%s264_s4 + $0x10] sm:$0xff] %vm142_vm1, %v151_v18 }
  0xfd   :  { %v141_v21 = vmul.f32 %v139_v19, %v133_v7 }
  0xfe   :  { %v140_v22 = vmul.f32 %v138_v20, %v132_v9 }
  0xff   :  { %144 = vst.msk [vmem:[%s264_s4 + $0x8] sm:$0xff] %vm142_vm1, %v141_v21 }
 0x100   :  { %143 = vst.msk [vmem:[%s264_s4] sm:$0xff] %vm142_vm1, %v140_v22 }
 0x101   :  { %160 = vsyncpa [#allocation3], 1 }
 0x102   :  { %161 = vsyncpa [#allocation5], 1 }

</bundles_post_ra>
